<compile_context>
chip_gen: v5e
topology: v5e:2x2
jax: 0.10.0
libtpu: 0.0.40
codegen_flags: <defaults>
</compile_context>

<pallas_src>
import functools
import math

import jax
import jax.numpy as jnp
from jax.experimental import pallas as pl
from jax.experimental.pallas import tpu as pltpu

_GELU_C = math.sqrt(2.0 / math.pi)


def _round_up(x, m):
    return (x + m - 1) // m * m


def _sublane_min(dtype):
    return {4: 8, 2: 16, 1: 32}[jnp.dtype(dtype).itemsize]


def _physical_vmem_bytes():
    try:
        info = pltpu.get_tpu_info()
        vmem = getattr(info, "vmem_capacity_bytes", None)
        if vmem:
            return int(vmem)
    except Exception:
        pass
    return 64 * 2**20  # conservative fallback (v7x size) -> safe on every chip


_PHYS_VMEM = _physical_vmem_bytes()
if _PHYS_VMEM <= 64 * 2**20:          # v7x: 64 MiB physical -> keep headroom
    _MATMUL_BUDGET = 40 * 2**20
    _VMEM_CAP = 52 * 2**20
else:                                  # v5e / v6e: 128 MiB physical
    _MATMUL_BUDGET = 64 * 2**20
    _VMEM_CAP = 96 * 2**20


# ---------------------------------------------------------------------------
# Fused (optional LayerNorm) + matmul(bf16 MXU) + bias + (optional GELU).
# Used for: norm1+QKV, out_proj, norm2+fc1+GELU, fc2, final_norm+LM head.
# ---------------------------------------------------------------------------
def _fused_linear_kernel(*refs, eps, use_ln, has_bias, activation):
    """refs = (x, [ln_scale, ln_shift], w_bf16, [bias], out, x_bf16_scratch)."""
    it = iter(refs)
    x_ref = next(it)
    scale_ref = next(it) if use_ln else None
    shift_ref = next(it) if use_ln else None
    w_ref = next(it)
    b_ref = next(it) if has_bias else None
    o_ref = next(it)
    x_sc = next(it)

    # LN + bf16 downcast of the activation tile: once per row tile (j == 0),
    # cached in VMEM scratch; the x block is resident across the column axis.
    @pl.when(pl.program_id(1) == 0)
    def _():
        x = x_ref[...].astype(jnp.float32)
        if use_ln:
            k = x.shape[-1]
            mean = jnp.sum(x, axis=-1, keepdims=True) * (1.0 / k)
            c = x - mean
            var = jnp.sum(c * c, axis=-1, keepdims=True) * (1.0 / k)  # unbiased=False
            x = (c * jax.lax.rsqrt(var + eps)) * scale_ref[...] + shift_ref[...]
        x_sc[...] = x.astype(x_sc.dtype)

    # bf16 x bf16 -> f32 accumulate on the MXU.
    acc = jnp.dot(x_sc[...], w_ref[...], preferred_element_type=jnp.float32)
    if has_bias:
        acc = acc + b_ref[...]
    if activation == "gelu":
        acc = 0.5 * acc * (1.0 + jnp.tanh(
            _GELU_C * (acc + 0.044715 * acc * acc * acc)))
    o_ref[...] = acc.astype(o_ref.dtype)


def fused_linear(x, w, b=None, *, ln=None, activation=None, eps=1e-5,
                 tm_target=1024):
    """y = act( LN(x) @ W + b ).  LN over the last axis of x is optional."""
    orig_shape = x.shape
    K = orig_shape[-1]
    N = w.shape[-1]
    rows = math.prod(orig_shape[:-1])
    x2 = x.reshape(rows, K)
    use_ln = ln is not None
    has_bias = b is not None
    in_itemsize = jnp.dtype(x.dtype).itemsize
    out_itemsize = in_itemsize
    sub = _sublane_min(x.dtype)

    # ---- column tile: lane-dense, full width for small N ----
    if N <= 1024 or N % 128 != 0:
        if N <= 1024:
            tn = N
        else:
            tn = 128  # TODO(synk): pre-pad such weights once at setup time
    elif N % 512 == 0:
        tn = 512
    elif N % 256 == 0:
        tn = 256
    else:
        tn = 128
    n_p = N if N % tn == 0 else _round_up(N, tn)

    # ---- row tile: as large as the budget allows (weight reuse) ----
    tm = max(sub, (min(tm_target, _round_up(rows, sub)) // sub) * sub)

    def wset(tm_, tn_):
        ws = 2 * tm_ * K * in_itemsize        # x block (double buffered)
        ws += 2 * K * tn_ * 2                 # bf16 weight block
        ws += 2 * tm_ * tn_ * out_itemsize    # output block
        ws += tm_ * K * 2                     # cached bf16 activation scratch
        if use_ln:
            ws += 2 * 2 * K * 4
        if has_bias:
            ws += 2 * tn_ * 4
        return ws

    # Over budget: shrink the column tile first (weight HBM traffic unchanged),
    # only then the row tile.
    while wset(tm, tn) > _MATMUL_BUDGET and tn >= 256 and tn % 256 == 0:
        tn //= 2
    while wset(tm, tn) > _MATMUL_BUDGET and tm > sub:
        tm = max(sub, ((tm // 2) // sub) * sub)

    rows_p = _round_up(rows, tm)
    if rows_p != rows:
        x2 = jnp.pad(x2, ((0, rows_p - rows), (0, 0)))
    w = w.astype(jnp.bfloat16)
    if n_p != N:
        w = jnp.pad(w, ((0, 0), (0, n_p - N)))

    in_arrays = [x2]
    in_specs = [pl.BlockSpec((tm, K), lambda i, j: (i, 0))]
    if use_ln:
        scale, shift = ln
        in_arrays += [scale.reshape(1, K).astype(jnp.float32),
                      shift.reshape(1, K).astype(jnp.float32)]
        in_specs += [pl.BlockSpec((1, K), lambda i, j: (0, 0)),
                     pl.BlockSpec((1, K), lambda i, j: (0, 0))]
    in_arrays.append(w)
    in_specs.append(pl.BlockSpec((K, tn), lambda i, j: (0, j)))
    if has_bias:
        b2 = b.reshape(1, N).astype(jnp.float32)
        if n_p != N:
            b2 = jnp.pad(b2, ((0, 0), (0, n_p - N)))
        in_arrays.append(b2)
        in_specs.append(pl.BlockSpec((1, tn), lambda i, j: (0, j)))

    vmem_limit = int(min(_VMEM_CAP, max(32 * 2**20, wset(tm, tn) + 8 * 2**20)))
    out = pl.pallas_call(
        functools.partial(_fused_linear_kernel, eps=eps, use_ln=use_ln,
                          has_bias=has_bias, activation=activation),
        out_shape=jax.ShapeDtypeStruct((rows_p, n_p), x.dtype),
        grid_spec=pltpu.PrefetchScalarGridSpec(
            num_scalar_prefetch=0,
            grid=(rows_p // tm, n_p // tn),
            in_specs=in_specs,
            out_specs=pl.BlockSpec((tm, tn), lambda i, j: (i, j)),
            scratch_shapes=[pltpu.VMEM((tm, K), jnp.bfloat16)],
        ),
        compiler_params=pltpu.CompilerParams(
            dimension_semantics=("parallel", "arbitrary"),
            vmem_limit_bytes=vmem_limit,
        ),
    )(*in_arrays)

    if rows_p != rows or n_p != N:
        out = out[:rows, :N]
    return out.reshape(orig_shape[:-1] + (N,))


# ---------------------------------------------------------------------------
# Causal self-attention, heads fused: one grid step per batch element consumes
# the (S, 3E) qkv slab and writes the (S, E) context directly.
# ---------------------------------------------------------------------------
def _attention_kernel(qkv_ref, o_ref, *, n_heads, sm_scale):
    S, threeE = qkv_ref.shape
    E = threeE // 3
    Dh = E // n_heads
    qkv = qkv_ref[...].astype(jnp.float32)                 # (S, 3E)
    row = jax.lax.broadcasted_iota(jnp.int32, (S, 1), 0)
    col = jax.lax.broadcasted_iota(jnp.int32, (1, S), 1)
    causal = col > row                                     # broadcasts to (S,S)
    dn = (((1,), (1,)), ((), ()))                          # q @ k^T over head_dim
    ctxs = []
    for h in range(n_heads):
        q = (qkv[:, h * Dh:(h + 1) * Dh] * sm_scale).astype(jnp.bfloat16)
        k = qkv[:, E + h * Dh:E + (h + 1) * Dh].astype(jnp.bfloat16)
        v = qkv[:, 2 * E + h * Dh:2 * E + (h + 1) * Dh].astype(jnp.bfloat16)
        s = jax.lax.dot_general(q, k, dn, preferred_element_type=jnp.float32)
        s = jnp.where(causal, -1e30, s)
        m = jnp.max(s, axis=-1, keepdims=True)
        p = jnp.exp(s - m)
        l = jnp.sum(p, axis=-1, keepdims=True)
        ctx = jnp.dot(p.astype(jnp.bfloat16), v,
                      preferred_element_type=jnp.float32)
        ctxs.append(ctx * pl.reciprocal(l, approx=True))   # EUP, not O(S^2) div
    o_ref[...] = jnp.concatenate(ctxs, axis=-1).astype(o_ref.dtype)


def causal_attention(qkv, n_heads):
    """qkv: (B, S, 3E) fused projections -> context (B, S, E)."""
    B, S, threeE = qkv.shape
    E = threeE // 3
    Dh = E // n_heads
    itemsize = jnp.dtype(qkv.dtype).itemsize
    ws = 2 * S * (threeE + E) * itemsize + 4 * S * S * 4 + 4 * S * E
    vmem_limit = int(min(_VMEM_CAP, max(32 * 2**20, 2 * ws)))
    # TODO(synk): switch to a KV-tiled online-softmax (flash) kernel for long
    # context_length; full-sequence S^2 scores only fit VMEM for short S.
    return pl.pallas_call(
        functools.partial(_attention_kernel, n_heads=n_heads,
                          sm_scale=1.0 / math.sqrt(Dh)),
        out_shape=jax.ShapeDtypeStruct((B, S, E), qkv.dtype),
        grid_spec=pltpu.PrefetchScalarGridSpec(
            num_scalar_prefetch=0,
            grid=(B,),
            in_specs=[pl.BlockSpec((pl.Squeezed(), S, threeE),
                                   lambda b: (b, 0, 0))],
            out_specs=pl.BlockSpec((pl.Squeezed(), S, E), lambda b: (b, 0, 0)),
        ),
        compiler_params=pltpu.CompilerParams(
            dimension_semantics=("parallel",),
            vmem_limit_bytes=vmem_limit,
        ),
    )(qkv)


# ---------------------------------------------------------------------------
# One-time parameter preparation: bf16 MXU weights in HBM, f32 (1,K) LN/bias
# vectors, LM-head weight pre-padded to a lane-dense width (no per-fwd pads).
# ---------------------------------------------------------------------------
def prepare_params(params, cfg):
    E, V = cfg["emb_dim"], cfg["vocab_size"]
    v_pad = _round_up(V, 512) if V > 512 else _round_up(V, 128)
    w_head = params["w_head"].astype(jnp.bfloat16)
    if v_pad != V:
        w_head = jnp.pad(w_head, ((0, 0), (0, v_pad - V)))

    def prep_block(blk):
        return {
            "norm1_scale": blk["norm1_scale"].reshape(1, E).astype(jnp.float32),
            "norm1_shift": blk["norm1_shift"].reshape(1, E).astype(jnp.float32),
            "w_qkv": blk["w_qkv"].astype(jnp.bfloat16),
            "w_out": blk["w_out"].astype(jnp.bfloat16),
            "b_out": blk["b_out"].reshape(1, -1).astype(jnp.float32),
            "norm2_scale": blk["norm2_scale"].reshape(1, E).astype(jnp.float32),
            "norm2_shift": blk["norm2_shift"].reshape(1, E).astype(jnp.float32),
            "w_fc1": blk["w_fc1"].astype(jnp.bfloat16),
            "b_fc1": blk["b_fc1"].reshape(1, -1).astype(jnp.float32),
            "w_fc2": blk["w_fc2"].astype(jnp.bfloat16),
            "b_fc2": blk["b_fc2"].reshape(1, -1).astype(jnp.float32),
        }

    return {
        "tok_emb": params["tok_emb"].astype(jnp.float32),
        "pos_emb": params["pos_emb"].astype(jnp.float32),
        "final_scale": params["final_scale"].reshape(1, E).astype(jnp.float32),
        "final_shift": params["final_shift"].reshape(1, E).astype(jnp.float32),
        "w_head": w_head,
        "blocks": [prep_block(b) for b in params["blocks"]],
    }


# ---------------------------------------------------------------------------
# GPT forward pass built from the kernels above.
# TODO(synk): dropout layers are identity (eval mode / drop_rate=0).
# ---------------------------------------------------------------------------
def gpt_forward(params, in_idx, cfg):
    """`params` must come from prepare_params (bf16 weights, padded LM head)."""
    B, S = in_idx.shape
    H = cfg["n_heads"]
    # TODO(synk): token/position embedding gathers are data-dependent and stay
    # in plain JAX (XLA gather).
    x = jnp.take(params["tok_emb"], in_idx, axis=0) + params["pos_emb"][:S][None]
    for blk in params["blocks"]:
        # Attention sub-block: fused norm1 + QKV proj, head-fused attention.
        qkv = fused_linear(x, blk["w_qkv"],
                           ln=(blk["norm1_scale"], blk["norm1_shift"]))
        ctx = causal_attention(qkv, H)
        x = x + fused_linear(ctx, blk["w_out"], blk["b_out"])
        # MLP sub-block: fused norm2 + fc1 + GELU, then fc2.
        h = fused_linear(x, blk["w_fc1"], blk["b_fc1"],
                         ln=(blk["norm2_scale"], blk["norm2_shift"]),
                         activation="gelu")
        x = x + fused_linear(h, blk["w_fc2"], blk["b_fc2"])
    # final_norm fused into the (pre-padded) LM-head projection.
    logits = fused_linear(x, params["w_head"],
                          ln=(params["final_scale"], params["final_shift"]))
    return logits[..., :cfg["vocab_size"]]


# ---------------------------------------------------------------------------
# Pure-JAX f32 reference (mirrors the PyTorch module) and parameter init.
# ---------------------------------------------------------------------------
def _ln_ref(x, scale, shift, eps=1e-5):
    mean = jnp.mean(x, axis=-1, keepdims=True)
    var = jnp.mean((x - mean) ** 2, axis=-1, keepdims=True)
    return scale * ((x - mean) / jnp.sqrt(var + eps)) + shift


def _gelu_ref(x):
    return 0.5 * x * (1.0 + jnp.tanh(jnp.sqrt(2.0 / jnp.pi)
                                     * (x + 0.044715 * x ** 3)))


def gpt_forward_ref(params, in_idx, cfg):
    B, S = in_idx.shape
    E, H = cfg["emb_dim"], cfg["n_heads"]
    Dh = E // H
    hi = jax.lax.Precision.HIGHEST
    x = jnp.take(params["tok_emb"], in_idx, axis=0) + params["pos_emb"][:S][None]
    for blk in params["blocks"]:
        h = _ln_ref(x, blk["norm1_scale"], blk["norm1_shift"])
        qkv = jnp.matmul(h, blk["w_qkv"], precision=hi)
        q, k, v = jnp.split(qkv, 3, axis=-1)
        q = q.reshape(B, S, H, Dh).transpose(0, 2, 1, 3)
        k = k.reshape(B, S, H, Dh).transpose(0, 2, 1, 3)
        v = v.reshape(B, S, H, Dh).transpose(0, 2, 1, 3)
        s = jnp.einsum("bhqd,bhkd->bhqk", q, k, precision=hi) / (Dh ** 0.5)
        mask = jnp.triu(jnp.ones((S, S), bool), 1)
        s = jnp.where(mask[None, None], -1e30, s)
        m = jnp.max(s, axis=-1, keepdims=True)
        p = jnp.exp(s - m)
        a = p / jnp.sum(p, axis=-1, keepdims=True)
        ctx = jnp.einsum("bhqk,bhkd->bhqd", a, v, precision=hi)
        ctx = ctx.transpose(0, 2, 1, 3).reshape(B, S, E)
        x = x + (jnp.matmul(ctx, blk["w_out"], precision=hi) + blk["b_out"])
        h = _ln_ref(x, blk["norm2_scale"], blk["norm2_shift"])
        h = _gelu_ref(jnp.matmul(h, blk["w_fc1"], precision=hi) + blk["b_fc1"])
        x = x + (jnp.matmul(h, blk["w_fc2"], precision=hi) + blk["b_fc2"])
    h = _ln_ref(x, params["final_scale"], params["final_shift"])
    return jnp.matmul(h, params["w_head"], precision=hi)


def init_params(key, cfg):
    E, V, C = cfg["emb_dim"], cfg["vocab_size"], cfg["context_length"]
    n_layers = cfg["n_layers"]
    keys = jax.random.split(key, 5 + n_layers)

    def nrm(k, shape, s):
        return s * jax.random.normal(k, shape, dtype=jnp.float32)

    def init_block(k):
        ks = jax.random.split(k, 11)
        return {
            "norm1_scale": 1.0 + nrm(ks[0], (E,), 0.1),
            "norm1_shift": nrm(ks[1], (E,), 0.1),
            "w_qkv": nrm(ks[2], (E, 3 * E), 0.02),   # [W_q | W_k | W_v], (in,out)
            "w_out": nrm(ks[3], (E, E), 0.02),
            "b_out": nrm(ks[4], (E,), 0.01),
            "norm2_scale": 1.0 + nrm(ks[5], (E,), 0.1),
            "norm2_shift": nrm(ks[6], (E,), 0.1),
            "w_fc1": nrm(ks[7], (E, 4 * E), 0.02),
            "b_fc1": nrm(ks[8], (4 * E,), 0.01),
            "w_fc2": nrm(ks[9], (4 * E, E), 0.02),
            "b_fc2": nrm(ks[10], (E,), 0.01),
        }

    return {
        "tok_emb": nrm(keys[0], (V, E), 1.0),
        "pos_emb": nrm(keys[1], (C, E), 1.0),
        "final_scale": 1.0 + nrm(keys[2], (E,), 0.1),
        "final_shift": nrm(keys[3], (E,), 0.1),
        "w_head": nrm(keys[4], (E, V), 0.02),
        "blocks": [init_block(keys[5 + i]) for i in range(n_layers)],
    }


if __name__ == "__main__":
    key = jax.random.PRNGKey(0)
    cfg = {
        "vocab_size": 67,
        "context_length": 8,
        "emb_dim": 32,
        "n_heads": 2,
        "n_layers": 2,
        "drop_rate": 0.0,
        "qkv_bias": False,
    }
    batch, seq = 2, 8

    k_params, k_idx = jax.random.split(key, 2)
    params = init_params(k_params, cfg)
    in_idx = jax.random.randint(k_idx, (batch, seq), 0, cfg["vocab_size"])

    prepared = prepare_params(params, cfg)          # one-time bf16/pad setup
    logits = gpt_forward(prepared, in_idx, cfg)
    logits = jax.block_until_ready(logits)
    assert logits.shape == (batch, seq, cfg["vocab_size"])

    ref_logits = gpt_forward_ref(params, in_idx, cfg)
    max_diff = float(jnp.max(jnp.abs(logits - ref_logits)))
    assert jnp.allclose(logits, ref_logits, atol=1e-2, rtol=1e-2), (
        f"GPT forward mismatch vs reference (max diff {max_diff})")

    print("KERNEL_OK")
</pallas_src>

<mosaic_0001>
module attributes {stable_mosaic.version = 11 : i64} {
  func.func @_fused_linear_kernel(%arg0: i32, %arg1: i32, %arg2: memref<16x32xf32, #tpu.memory_space<vmem>>, %arg3: memref<1x32xf32, #tpu.memory_space<vmem>>, %arg4: memref<1x32xf32, #tpu.memory_space<vmem>>, %arg5: memref<32x96xbf16, #tpu.memory_space<vmem>>, %arg6: memref<16x96xf32, #tpu.memory_space<vmem>>, %arg7: memref<16x32xbf16, #tpu.memory_space<vmem>>) attributes {dimension_semantics = [#tpu.dimension_semantics<parallel>, #tpu.dimension_semantics<arbitrary>], iteration_bounds = array<i64: 1, 1>, scalar_prefetch = 0 : i64, scratch_operands = 1 : i64, tpu.core_type = #tpu.core_type<tc>, window_params = [{transform_indices = @transform_0, window_bounds = array<i64: 16, 32>}, {pipeline_mode = #tpu.pipeline_mode<synchronous>, transform_indices = @transform_1, window_bounds = array<i64: 1, 32>}, {pipeline_mode = #tpu.pipeline_mode<synchronous>, transform_indices = @transform_2, window_bounds = array<i64: 1, 32>}, {transform_indices = @transform_3, window_bounds = array<i64: 32, 96>}, {transform_indices = @transform_4, window_bounds = array<i64: 16, 96>}]} {
    %c0_i32 = arith.constant 0 : i32
    %0 = arith.cmpi eq, %arg1, %c0_i32 : i32
    %1 = arith.extui %0 : i1 to i32
    %c0_i32_0 = arith.constant 0 : i32
    %2 = arith.cmpi ne, %1, %c0_i32_0 : i32
    scf.if %2 {
      %c0_6 = arith.constant 0 : index
      %c0_7 = arith.constant 0 : index
      %7 = vector.load %arg2[%c0_6, %c0_7] : memref<16x32xf32, #tpu.memory_space<vmem>>, vector<16x32xf32>
      %cst_8 = arith.constant dense<0.000000e+00> : vector<16xf32>
      %8 = vector.multi_reduction <add>, %7, %cst_8 [1] : vector<16x32xf32> to vector<16xf32>
      %9 = vector.shape_cast %8 : vector<16xf32> to vector<16x1xf32>
      %cst_9 = arith.constant 3.125000e-02 : f32
      %10 = vector.broadcast %cst_9 : f32 to vector<16x1xf32>
      %11 = arith.mulf %9, %10 : vector<16x1xf32>
      %12 = vector.broadcast %11 : vector<16x1xf32> to vector<16x32xf32>
      %13 = arith.subf %7, %12 : vector<16x32xf32>
      %14 = arith.mulf %13, %13 : vector<16x32xf32>
      %cst_10 = arith.constant dense<0.000000e+00> : vector<16xf32>
      %15 = vector.multi_reduction <add>, %14, %cst_10 [1] : vector<16x32xf32> to vector<16xf32>
      %16 = vector.shape_cast %15 : vector<16xf32> to vector<16x1xf32>
      %cst_11 = arith.constant 3.125000e-02 : f32
      %17 = vector.broadcast %cst_11 : f32 to vector<16x1xf32>
      %18 = arith.mulf %16, %17 : vector<16x1xf32>
      %cst_12 = arith.constant 9.99999974E-6 : f32
      %19 = vector.broadcast %cst_12 : f32 to vector<16x1xf32>
      %20 = arith.addf %18, %19 : vector<16x1xf32>
      %21 = math.rsqrt %20 : vector<16x1xf32>
      %22 = vector.broadcast %21 : vector<16x1xf32> to vector<16x32xf32>
      %23 = arith.mulf %13, %22 : vector<16x32xf32>
      %c0_13 = arith.constant 0 : index
      %c0_14 = arith.constant 0 : index
      %24 = vector.load %arg3[%c0_13, %c0_14] : memref<1x32xf32, #tpu.memory_space<vmem>>, vector<1x32xf32>
      %25 = vector.broadcast %24 : vector<1x32xf32> to vector<16x32xf32>
      %26 = arith.mulf %23, %25 : vector<16x32xf32>
      %c0_15 = arith.constant 0 : index
      %c0_16 = arith.constant 0 : index
      %27 = vector.load %arg4[%c0_15, %c0_16] : memref<1x32xf32, #tpu.memory_space<vmem>>, vector<1x32xf32>
      %28 = vector.broadcast %27 : vector<1x32xf32> to vector<16x32xf32>
      %29 = arith.addf %26, %28 : vector<16x32xf32>
      %30 = arith.truncf %29 : vector<16x32xf32> to vector<16x32xbf16>
      %c0_17 = arith.constant 0 : index
      %c0_18 = arith.constant 0 : index
      %31 = vector.load %arg7[%c0_17, %c0_18] : memref<16x32xbf16, #tpu.memory_space<vmem>>, vector<16x32xbf16>
      tpu.vector_store %arg7[%c0_17, %c0_18], %30 {strides = array<i32>} : memref<16x32xbf16, #tpu.memory_space<vmem>>, vector<16x32xbf16>,
    } else {
    }
    %c0 = arith.constant 0 : index
    %c0_1 = arith.constant 0 : index
    %3 = vector.load %arg7[%c0, %c0_1] : memref<16x32xbf16, #tpu.memory_space<vmem>>, vector<16x32xbf16>
    %c0_2 = arith.constant 0 : index
    %c0_3 = arith.constant 0 : index
    %4 = vector.load %arg5[%c0_2, %c0_3] : memref<32x96xbf16, #tpu.memory_space<vmem>>, vector<32x96xbf16>
    %cst = arith.constant dense<0.000000e+00> : vector<16x96xf32>
    %5 = tpu.matmul %3, %4, %cst {dimension_numbers = #tpu.dot_dimension_numbers<[1], [0], [0], [1], [0, 0, 1, 1], [], []>} : vector<16x32xbf16>, vector<32x96xbf16>, vector<16x96xf32> -> vector<16x96xf32>
    %c0_4 = arith.constant 0 : index
    %c0_5 = arith.constant 0 : index
    %6 = vector.load %arg6[%c0_4, %c0_5] : memref<16x96xf32, #tpu.memory_space<vmem>>, vector<16x96xf32>
    tpu.vector_store %arg6[%c0_4, %c0_5], %5 {strides = array<i32>} : memref<16x96xf32, #tpu.memory_space<vmem>>, vector<16x96xf32>,
    return
  }
  func.func @transform_0(%arg0: i32, %arg1: i32) -> (i32, i32) {
    %c0_i32 = arith.constant 0 : i32
    %c0_i32_0 = arith.constant 0 : i32
    return %arg0, %c0_i32 : i32, i32
  }
  func.func @transform_1(%arg0: i32, %arg1: i32) -> (i32, i32) {
    %c0_i32 = arith.constant 0 : i32
    %c0_i32_0 = arith.constant 0 : i32
    %c0_i32_1 = arith.constant 0 : i32
    return %c0_i32, %c0_i32_0 : i32, i32
  }
  func.func @transform_2(%arg0: i32, %arg1: i32) -> (i32, i32) {
    %c0_i32 = arith.constant 0 : i32
    %c0_i32_0 = arith.constant 0 : i32
    %c0_i32_1 = arith.constant 0 : i32
    return %c0_i32, %c0_i32_0 : i32, i32
  }
  func.func @transform_3(%arg0: i32, %arg1: i32) -> (i32, i32) {
    %c0_i32 = arith.constant 0 : i32
    %c0_i32_0 = arith.constant 0 : i32
    return %c0_i32, %arg1 : i32, i32
  }
  func.func @transform_4(%arg0: i32, %arg1: i32) -> (i32, i32) {
    %c0_i32 = arith.constant 0 : i32
    return %arg0, %arg1 : i32, i32
  }
}

</mosaic_0001>

<bundles_post_ra>
// kernel: tpu_custom_call.1
= control target key start
LH: loop header
LB: loop body
LE: loop exit
PB: predicated region body
PF: predicated region fallthrough
CT: control target
= control target key end

     0   :  { %9 = vsyncpa [#allocation4], 0  ;;  %s387_s0 = inlined_call_operand.hbm [shape: f32[16,32], index: 0, kind: input, shape index: {}]   ;;  %s388_s1 = inlined_call_operand.hbm [shape: f32[1,32], index: 1, kind: input, shape index: {}]   ;;  %s389_s2 = inlined_call_operand.vmem [shape: f32[1,32], index: 2, kind: input, shape index: {}]   ;;  %s390_s3 = inlined_call_operand.hbm [shape: bf16[32,96], index: 3, kind: input, shape index: {}]   ;;  %s391_s4 = inlined_call_operand.hbm [shape: f32[16,96], index: 4, kind: output, shape index: {}]  }
   0x1   :  { %10 = vsyncpa [#allocation7], 0  ;;  %s30_s17 = sshll.u32 %s388_s1, 4  ;;  %s31_s17 = int_to_ptr.hbm [resolvable:$true] %s30_s17 }
   0x2   :  { %11 = vsyncpa [#allocation5], 0  ;;  %s328_s18 = smov [#allocation6]   ;;  %s16_s22 = sshll.u32 %s387_s0, 4  ;;  %s17_s22 = int_to_ptr.hbm [resolvable:$true] %s16_s22 }
   0x3   :  { %s32_s19 = sshll.u32 %s328_s18, 4  ;;  %s329_s23 = smov [#allocation3]   ;;  %s33_s19 = int_to_ptr.vmem [resolvable:$true] %s32_s19 }
   0x4   :  { %35 = dma.hbm_to_vmem [thread:$0]  %s31_s17, 16, %s33_s19, [#allocation7]  }
   0x5   :  { %s18_s24 = sshll.u32 %s329_s23, 4  ;;  %s330_s25 = smov 128   ;;  %s19_s24 = int_to_ptr.vmem [resolvable:$true] %s18_s24 }
   0x6   :  { %s331_s26 = smov 8   ;;  %s42_s28 = sshll.u32 %s390_s3, 4  ;;  %s43_s28 = int_to_ptr.hbm [resolvable:$true] %s42_s28 }
   0x7   :  { %24 = dma.hbm_to_vmem [thread:$0]  %s17_s22, 256, %s19_s24, [#allocation4], %s330_s25, %s330_s25, %s331_s26  }
   0x8   :  { %s332_s29 = smov [#allocation8]   ;;  %s333_s0 = smov 64  }
   0x9   :  { %s44_s30 = sshll.u32 %s332_s29, 4  ;;  %s334_s5 = smov 4   ;;  %s45_s30 = int_to_ptr.vmem [resolvable:$true] %s44_s30 }
   0xa   :  { %50 = dma.hbm_to_vmem [thread:$0]  %s43_s28, 256, %s45_s30, [#allocation7], %s333_s0, %s333_s0, %s334_s5  }
   0xb   :  { %322 = dma.done.wait [#allocation4], 256  }
   0xc   :  { %323 = vsyncadd [#allocation4], 4294967040 }
   0xd   :  { %324 = dma.done.wait [#allocation7], 272  }
   0xe   :  { %325 = vsyncadd [#allocation7], 4294967024  ;;  %vm70_vm0 = vcmask 261120   ;;  %v68_v0 = vld [vmem:[#allocation3] sm:$0xff]  ;;  %v69_v2 = vld [vmem:[#allocation3 + $0x8] sm:$0xff]  ;;  %vm129_vm5 = vcmask 257024  }
   0xf   :  { %v71_v1 = vsel %vm70_vm0, %v68_v0, 0.0  ;;  %v74_v3 = vsel %vm70_vm0, %v69_v2, 0.0  ;;  %v211_v17 = vld [vmem:[#allocation8 + $0x8] sm:$0xff]  ;;  %v210_v20 = vld [vmem:[#allocation8] sm:$0xff]  ;;  %v220_v30 = vld [vmem:[#allocation6] ss:$0 sm:$0xff] }
  0x10   :  { %72 = vadd.xlane.f32.xlu0 %v71_v1  ;;  %165 = vmatpush.bf16.msra.mxu0 %v211_v17  ;;  %v221_v33 = vld [vmem:[%s389_s2] ss:$0 sm:$0xff]  ;;  %vm173_vm8 = vcmask 785408   ;;  %s335_s2 = smov [#allocation9]   ;;  %s182_s10 = sshll.u32 %s391_s4, 4  ;;  %s183_s10 = int_to_ptr.hbm [resolvable:$true] %s182_s10 }
  0x11   :  { %s180_s7 = sshll.u32 %s335_s2, 4  ;;  %s181_s7 = int_to_ptr.vmem [resolvable:$true] %s180_s7 }
  0x14   :  { %166 = vmatpush.bf16.msra.mxu0 %v210_v20 }
  0x18   :  { %75 = vadd.xlane.f32.xlu0 %v74_v3 }
  0x83   :  { %v73_v4 = vpop.xlane.xlu0 %72 }
  0x84   :  { %v77_v5 = vmul.f32 0.03125, %v73_v4 }
  0x86   :  { %v79_v6 = vsub.f32 %v68_v0, %v77_v5 }
  0x88   :  { %v81_v7 = vmul.f32 %v79_v6, %v79_v6 }
  0x8a   :  { %v83_v8 = vsel %vm70_vm0, %v81_v7, 0.0 }
  0x8b   :  { %84 = vadd.xlane.f32.xlu1 %v83_v8  ;;  %v76_v9 = vpop.xlane.xlu0 %75 }
  0x8c   :  { %v78_v10 = vmul.f32 0.03125, %v76_v9 }
  0x8e   :  { %v80_v11 = vsub.f32 %v69_v2, %v78_v10 }
  0x90   :  { %v82_v12 = vmul.f32 %v80_v11, %v80_v11 }
  0x92   :  { %v86_v13 = vsel %vm70_vm0, %v82_v12, 0.0 }
  0x93   :  { %87 = vadd.xlane.f32.xlu1 %v86_v13 }
  0xfe   :  { %v85_v14 = vpop.xlane.xlu1 %84 }
  0xff   :  { %v89_v15 = vmul.f32 0.03125, %v85_v14 }
 0x101   :  { %v91_v16 = vadd.f32 1e-05, %v89_v15 }
 0x103   :  { %222 = vrsqrt.f32 %v91_v16  ;;  %vm99_vm2 = vweird.f32 %v91_v16 }
 0x106   :  { %v88_v18 = vpop.xlane.xlu1 %87 }
 0x107   :  { %v90_v19 = vmul.f32 0.03125, %v88_v18 }
 0x109   :  { %v223_v21 = vpop.eup %222  ;;  %v92_v22 = vadd.f32 1e-05, %v90_v19 }
 0x10a   :  { %v94_v23 = vmul.f32 %v223_v21, %v91_v16  ;;  %vm100_vm1 = vweird.f32 %v223_v21 }
 0x10b   :  { %224 = vrsqrt.f32 %v92_v22  ;;  %vm101_vm3 = vmor %vm99_vm2, %vm100_vm1  ;;  %vm109_vm6 = vweird.f32 %v92_v22 }
 0x10c   :  { %v95_v24 = vmul.f32 %v223_v21, %v94_v23 }
 0x10e   :  { %v96_v25 = vmul.f32 0.5, %v95_v24 }
 0x110   :  { %v97_v26 = vsub.f32 1.5, %v96_v25 }
 0x111   :  { %v225_v27 = vpop.eup %224 }
 0x112   :  { %v98_v28 = vmul.f32 %v223_v21, %v97_v26  ;;  %v104_v29 = vmul.f32 %v225_v27, %v92_v22  ;;  %vm110_vm4 = vweird.f32 %v225_v27 }
 0x113   :  { %vm111_vm7 = vmor %vm109_vm6, %vm110_vm4 }
 0x114   :  { %v102_v31 = vsel %vm101_vm3, %v223_v21, %v98_v28  ;;  %v105_v32 = vmul.f32 %v225_v27, %v104_v29 }
 0x115   :  { %v113_v34 = vmul.f32 %v102_v31, %v79_v6 }
 0x116   :  { %v106_v35 = vmul.f32 0.5, %v105_v32 }
 0x117   :  { %v119_v36 = vmul.f32 %v220_v30, %v113_v34 }
 0x118   :  { %v107_v37 = vsub.f32 1.5, %v106_v35 }
 0x119   :  { %v125_v38 = vadd.f32 %v221_v33, %v119_v36 }
 0x11a   :  { %v108_v39 = vmul.f32 %v225_v27, %v107_v37 }
 0x11b   :  { %v127_v40 = vpack.c.bf16 %v125_v38, %v125_v38 }
 0x11c   :  { %v112_v41 = vsel %vm111_vm7, %v225_v27, %v108_v39 }
 0x11d   :  { %130 = vst.msk [vmem:[#allocation2] sm:$0xf] %vm129_vm5, %v127_v40  ;;  %v114_v42 = vmul.f32 %v112_v41, %v80_v11 }
 0x11f   :  { %v120_v43 = vmul.f32 %v220_v30, %v114_v42 }
 0x121   :  { %v126_v44 = vadd.f32 %v221_v33, %v120_v43 }
 0x123   :  { %v128_v45 = vpack.c.bf16 %v126_v44, %v126_v44 }
 0x125   :  { %131 = vst.msk [vmem:[#allocation2 + $0x4] sm:$0xf] %vm129_vm5, %v128_v45 }
 0x12c   :  { %v209_v46 = vld [vmem:[#allocation2] sm:$0xff] }
 0x12d   :  { %208 = vmatmul.msk.bf16.vlgmr.msra.gmra.mxu0 %vm70_vm0, %v209_v46 }
 0x1aa   :  { %v168_v47 = vpop.f32.mrf.mxu0 }
 0x1ab   :  { %174 = vst.msk [vmem:[#allocation9] sm:$0xff] %vm173_vm8, %v168_v47 }
 0x1b2   :  { %v170_v48 = vpop.f32.mrf.mxu0 }
 0x1b3   :  { %175 = vst.msk [vmem:[#allocation9 + $0x8] sm:$0xff] %vm173_vm8, %v170_v48 }
 0x1b4   :  { %188 = dma.vmem_to_hbm [thread:$0]  %s181_s7, 256, %s183_s10, [#allocation5], %s330_s25, %s330_s25, %s331_s26  }
 0x1b5   :  { %326 = dma.done.wait [#allocation5], 256  }
 0x1b6   :  { %327 = vsyncadd [#allocation5], 4294967040 }
 0x1b7   :  { %193 = vsyncpa [#allocation4], 1 }
 0x1b8   :  { %194 = vsyncpa [#allocation7], 1 }
 0x1b9   :  { %195 = vsyncpa [#allocation5], 1 }

</bundles_post_ra>
